<compile_context>
chip_gen: v6e
topology: v6e:2x2x1
jax: 0.10.0
libtpu: 0.0.40
codegen_flags: <defaults>
</compile_context>

<pallas_src>
import functools

import jax
import jax.numpy as jnp
from jax import lax
from jax.experimental import pallas as pl
from jax.experimental.pallas import tpu as pltpu


def _topk_relu_scatter_kernel(x_ref, result_ref, idx_ref, *, k: int):
    """One batch tile: k rounds of (row max -> smallest-index argmax -> knock-out)."""
    x = x_ref[...]
    b, d = x.shape
    kp = idx_ref.shape[-1]          # lane-padded index width (multiple of 128)

    # bf16 work buffer stays bf16 (2x elements per vreg on v6e/v7x); other
    # dtypes compute in f32.
    compute_dtype = jnp.bfloat16 if x.dtype == jnp.bfloat16 else jnp.float32
    work0 = x.astype(compute_dtype)
    neg_inf = jnp.array(-jnp.inf, compute_dtype)

    # Hoisted iotas (JAX does not CSE broadcast_in_dim; build them once).
    col = lax.broadcasted_iota(jnp.int32, (b, d), 1)     # lane index
    colk = lax.broadcasted_iota(jnp.int32, (b, kp), 1)   # output lane index
    idxs0 = jnp.zeros((b, kp), jnp.int32)
    d_fill = jnp.int32(d)

    def body(j, carry):
        work, idxs = carry
        m = jnp.max(work, axis=-1, keepdims=True)                     # (b, 1)
        # Smallest index attaining the max (torch-style deterministic pick).
        idx = jnp.min(jnp.where(work == m, col, d_fill),
                      axis=-1, keepdims=True)                         # (b, 1)
        idxs = jnp.where(colk == j, idx, idxs)
        work = jnp.where(col == idx, neg_inf, work)  # knock out for next round
        return work, idxs

    # k is static and small: fully unroll so the scheduler can overlap the
    # off-critical-path work (index writes, selects) across rounds.
    work, idxs = lax.fori_loop(0, k, body, (work0, idxs0), unroll=True)

    # Selected positions are exactly the knocked-out lanes.  Genuine -inf
    # inputs also compare equal, but relu(-inf) == 0 so the written value is
    # identical to the zero background either way (guard not needed).
    selected = work == neg_inf
    zero = jnp.zeros((), x.dtype)
    result_ref[...] = jnp.where(selected, jnp.maximum(x, zero), zero).astype(
        result_ref.dtype)
    idx_ref[...] = idxs


def topk_activation(x: jax.Array, k: int, *, block_batch=None):
    """Pallas wrapper: batch-tiled, pipelined, megacore-parallel."""
    batch, d_in = x.shape
    if k > d_in:
        raise ValueError(f"k={k} must be <= d_in={d_in}")
    itemsize = jnp.dtype(x.dtype).itemsize
    # Lane-dense index output: pad k up to a multiple of 128, slice afterwards.
    k_pad = ((k + 127) // 128) * 128

    if block_batch is None:
        # Budget ~2 MiB per (block_batch, d_in) input tile.  x and result
        # tiles are each double-buffered (4 tiles) and the kernel keeps a work
        # buffer plus an int32 lane-iota live (~2 more tile-equivalents), so
        # ~2 MiB keeps total VMEM well under the 32 MiB scoped limit on every
        # chip generation (v7x only has 64 MiB physical VMEM).
        rows = (2 * 1024 * 1024) // max(d_in * itemsize, 1)
        block_batch = int(max(8, min(1024, rows)))
    if block_batch >= batch:
        block_batch = batch                       # full dim: no (8, .) constraint
    else:
        block_batch = max(8, (block_batch // 8) * 8)

    grid = (pl.cdiv(batch, block_batch),)
    kernel = functools.partial(_topk_relu_scatter_kernel, k=k)

    cost = pl.CostEstimate(
        flops=int(6 * batch * d_in * k),
        transcendentals=0,
        bytes_accessed=int(2 * batch * d_in * itemsize + batch * k_pad * 4),
    )

    result, idx_pad = pl.pallas_call(
        kernel,
        out_shape=(
            jax.ShapeDtypeStruct((batch, d_in), x.dtype),
            jax.ShapeDtypeStruct((batch, k_pad), jnp.int32),
        ),
        grid=grid,
        in_specs=[pl.BlockSpec((block_batch, d_in), lambda i: (i, 0))],
        out_specs=(
            pl.BlockSpec((block_batch, d_in), lambda i: (i, 0)),
            pl.BlockSpec((block_batch, k_pad), lambda i: (i, 0)),
        ),
        compiler_params=pltpu.CompilerParams(
            dimension_semantics=("parallel",),
            vmem_limit_bytes=32 * 1024 * 1024,
        ),
        cost_estimate=cost,
    )(x)
    return result, idx_pad[:, :k]


def _reference(x: jax.Array, k: int):
    """Pure-JAX reference matching the PyTorch forward."""
    vals, idxs = lax.top_k(x, k)
    vals = jnp.maximum(vals, 0.0)
    result = jax.vmap(lambda r, i, v: r.at[i].set(v))(jnp.zeros_like(x), idxs, vals)
    return result, idxs.astype(jnp.int32)


def _check(x, k, **kw):
    result, indices = topk_activation(x, k, **kw)
    jax.block_until_ready((result, indices))
    ref_result, ref_indices = _reference(x, k)

    assert result.shape == x.shape and result.dtype == x.dtype
    assert indices.shape == (x.shape[0], k) and indices.dtype == jnp.int32
    assert jnp.allclose(result, ref_result, atol=1e-6), "result mismatch"
    # Indices may differ in tie order only; compare the multiset of selected
    # values per row.
    sel = jnp.take_along_axis(x, indices, axis=-1)
    ref_sel = jnp.take_along_axis(x, ref_indices, axis=-1)
    assert jnp.allclose(jnp.sort(sel, axis=-1), jnp.sort(ref_sel, axis=-1),
                        atol=1e-6), "selected-value multiset mismatch"


if __name__ == "__main__":
    key = jax.random.PRNGKey(0)

    # Small shape consistent with the module's (batch, d_in) forward.
    k1, k2 = jax.random.split(key)
    x1 = jax.random.normal(k1, (8, 128), dtype=jnp.float32)
    _check(x1, k=4)

    # Multi-block path (grid > 1) with a forced small batch tile.
    x2 = jax.random.normal(k2, (24, 256), dtype=jnp.float32)
    _check(x2, k=5, block_batch=8)

    print("KERNEL_OK")
</pallas_src>

<mosaic_0001>
module attributes {stable_mosaic.version = 11 : i64} {
  func.func @_topk_relu_scatter_kernel(%arg0: i32, %arg1: memref<8x128xf32, #tpu.memory_space<vmem>>, %arg2: memref<8x128xf32, #tpu.memory_space<vmem>>, %arg3: memref<8x128xi32, #tpu.memory_space<vmem>>) attributes {dimension_semantics = [#tpu.dimension_semantics<parallel>], iteration_bounds = array<i64: 1>, scalar_prefetch = 0 : i64, scratch_operands = 0 : i64, tpu.core_type = #tpu.core_type<tc>, window_params = [{transform_indices = @transform_0, window_bounds = array<i64: 8, 128>}, {transform_indices = @transform_1, window_bounds = array<i64: 8, 128>}, {transform_indices = @transform_2, window_bounds = array<i64: 8, 128>}]} {
    %c0 = arith.constant 0 : index
    %c0_0 = arith.constant 0 : index
    %0 = vector.load %arg1[%c0, %c0_0] : memref<8x128xf32, #tpu.memory_space<vmem>>, vector<8x128xf32>
    %1 = tpu.iota {dimensions = array<i32: 1>} : vector<8x128xi32>
    %2 = tpu.iota {dimensions = array<i32: 1>} : vector<8x128xi32>
    %c0_i32 = arith.constant 0 : i32
    %3 = vector.broadcast %c0_i32 : i32 to vector<8x128xi32>
    %c128_i32 = arith.constant 128 : i32
    %cst = arith.constant 0xFF800000 : f32
    %c0_i32_1 = arith.constant 0 : i32
    %cst_2 = arith.constant dense<0xFF800000> : vector<8xf32>
    %4 = vector.multi_reduction <maximumf>, %0, %cst_2 [1] : vector<8x128xf32> to vector<8xf32>
    %5 = vector.shape_cast %4 : vector<8xf32> to vector<8x1xf32>
    %6 = vector.broadcast %5 : vector<8x1xf32> to vector<8x128xf32>
    %7 = arith.cmpf oeq, %0, %6 : vector<8x128xf32>
    %8 = vector.broadcast %c128_i32 : i32 to vector<8x128xi32>
    %9 = arith.select %7, %1, %8 : vector<8x128xi1>, vector<8x128xi32>
    %cst_3 = arith.constant dense<2147483647> : vector<8xi32>
    %10 = vector.multi_reduction <minsi>, %9, %cst_3 [1] : vector<8x128xi32> to vector<8xi32>
    %11 = vector.shape_cast %10 : vector<8xi32> to vector<8x1xi32>
    %12 = vector.broadcast %c0_i32_1 : i32 to vector<8x128xi32>
    %13 = arith.cmpi eq, %2, %12 : vector<8x128xi32>
    %14 = vector.shape_cast %11 : vector<8x1xi32> to vector<8x1xi32>
    %15 = vector.broadcast %14 : vector<8x1xi32> to vector<8x128xi32>
    %16 = arith.select %13, %15, %3 : vector<8x128xi1>, vector<8x128xi32>
    %17 = vector.broadcast %11 : vector<8x1xi32> to vector<8x128xi32>
    %18 = arith.cmpi eq, %1, %17 : vector<8x128xi32>
    %19 = vector.broadcast %cst : f32 to vector<8x128xf32>
    %20 = arith.select %18, %19, %0 : vector<8x128xi1>, vector<8x128xf32>
    %c1_i32 = arith.constant 1 : i32
    %cst_4 = arith.constant dense<0xFF800000> : vector<8xf32>
    %21 = vector.multi_reduction <maximumf>, %20, %cst_4 [1] : vector<8x128xf32> to vector<8xf32>
    %22 = vector.shape_cast %21 : vector<8xf32> to vector<8x1xf32>
    %23 = vector.broadcast %22 : vector<8x1xf32> to vector<8x128xf32>
    %24 = arith.cmpf oeq, %20, %23 : vector<8x128xf32>
    %25 = vector.broadcast %c128_i32 : i32 to vector<8x128xi32>
    %26 = arith.select %24, %1, %25 : vector<8x128xi1>, vector<8x128xi32>
    %cst_5 = arith.constant dense<2147483647> : vector<8xi32>
    %27 = vector.multi_reduction <minsi>, %26, %cst_5 [1] : vector<8x128xi32> to vector<8xi32>
    %28 = vector.shape_cast %27 : vector<8xi32> to vector<8x1xi32>
    %29 = vector.broadcast %c1_i32 : i32 to vector<8x128xi32>
    %30 = arith.cmpi eq, %2, %29 : vector<8x128xi32>
    %31 = vector.shape_cast %28 : vector<8x1xi32> to vector<8x1xi32>
    %32 = vector.broadcast %31 : vector<8x1xi32> to vector<8x128xi32>
    %33 = arith.select %30, %32, %16 : vector<8x128xi1>, vector<8x128xi32>
    %34 = vector.broadcast %28 : vector<8x1xi32> to vector<8x128xi32>
    %35 = arith.cmpi eq, %1, %34 : vector<8x128xi32>
    %36 = vector.broadcast %cst : f32 to vector<8x128xf32>
    %37 = arith.select %35, %36, %20 : vector<8x128xi1>, vector<8x128xf32>
    %c2_i32 = arith.constant 2 : i32
    %cst_6 = arith.constant dense<0xFF800000> : vector<8xf32>
    %38 = vector.multi_reduction <maximumf>, %37, %cst_6 [1] : vector<8x128xf32> to vector<8xf32>
    %39 = vector.shape_cast %38 : vector<8xf32> to vector<8x1xf32>
    %40 = vector.broadcast %39 : vector<8x1xf32> to vector<8x128xf32>
    %41 = arith.cmpf oeq, %37, %40 : vector<8x128xf32>
    %42 = vector.broadcast %c128_i32 : i32 to vector<8x128xi32>
    %43 = arith.select %41, %1, %42 : vector<8x128xi1>, vector<8x128xi32>
    %cst_7 = arith.constant dense<2147483647> : vector<8xi32>
    %44 = vector.multi_reduction <minsi>, %43, %cst_7 [1] : vector<8x128xi32> to vector<8xi32>
    %45 = vector.shape_cast %44 : vector<8xi32> to vector<8x1xi32>
    %46 = vector.broadcast %c2_i32 : i32 to vector<8x128xi32>
    %47 = arith.cmpi eq, %2, %46 : vector<8x128xi32>
    %48 = vector.shape_cast %45 : vector<8x1xi32> to vector<8x1xi32>
    %49 = vector.broadcast %48 : vector<8x1xi32> to vector<8x128xi32>
    %50 = arith.select %47, %49, %33 : vector<8x128xi1>, vector<8x128xi32>
    %51 = vector.broadcast %45 : vector<8x1xi32> to vector<8x128xi32>
    %52 = arith.cmpi eq, %1, %51 : vector<8x128xi32>
    %53 = vector.broadcast %cst : f32 to vector<8x128xf32>
    %54 = arith.select %52, %53, %37 : vector<8x128xi1>, vector<8x128xf32>
    %c3_i32 = arith.constant 3 : i32
    %cst_8 = arith.constant dense<0xFF800000> : vector<8xf32>
    %55 = vector.multi_reduction <maximumf>, %54, %cst_8 [1] : vector<8x128xf32> to vector<8xf32>
    %56 = vector.shape_cast %55 : vector<8xf32> to vector<8x1xf32>
    %57 = vector.broadcast %56 : vector<8x1xf32> to vector<8x128xf32>
    %58 = arith.cmpf oeq, %54, %57 : vector<8x128xf32>
    %59 = vector.broadcast %c128_i32 : i32 to vector<8x128xi32>
    %60 = arith.select %58, %1, %59 : vector<8x128xi1>, vector<8x128xi32>
    %cst_9 = arith.constant dense<2147483647> : vector<8xi32>
    %61 = vector.multi_reduction <minsi>, %60, %cst_9 [1] : vector<8x128xi32> to vector<8xi32>
    %62 = vector.shape_cast %61 : vector<8xi32> to vector<8x1xi32>
    %63 = vector.broadcast %c3_i32 : i32 to vector<8x128xi32>
    %64 = arith.cmpi eq, %2, %63 : vector<8x128xi32>
    %65 = vector.shape_cast %62 : vector<8x1xi32> to vector<8x1xi32>
    %66 = vector.broadcast %65 : vector<8x1xi32> to vector<8x128xi32>
    %67 = arith.select %64, %66, %50 : vector<8x128xi1>, vector<8x128xi32>
    %68 = vector.broadcast %62 : vector<8x1xi32> to vector<8x128xi32>
    %69 = arith.cmpi eq, %1, %68 : vector<8x128xi32>
    %70 = vector.broadcast %cst : f32 to vector<8x128xf32>
    %71 = arith.select %69, %70, %54 : vector<8x128xi1>, vector<8x128xf32>
    %c4_i32 = arith.constant 4 : i32
    %cst_10 = arith.constant 0xFF800000 : f32
    %72 = vector.broadcast %cst_10 : f32 to vector<8x128xf32>
    %73 = arith.cmpf oeq, %71, %72 : vector<8x128xf32>
    %cst_11 = arith.constant 0.000000e+00 : f32
    %74 = vector.broadcast %cst_11 : f32 to vector<8x128xf32>
    %75 = arith.maximumf %0, %74 : vector<8x128xf32>
    %cst_12 = arith.constant 0.000000e+00 : f32
    %76 = vector.broadcast %cst_12 : f32 to vector<8x128xf32>
    %77 = arith.select %73, %75, %76 : vector<8x128xi1>, vector<8x128xf32>
    %c0_13 = arith.constant 0 : index
    %c0_14 = arith.constant 0 : index
    %78 = vector.load %arg2[%c0_13, %c0_14] : memref<8x128xf32, #tpu.memory_space<vmem>>, vector<8x128xf32>
    tpu.vector_store %arg2[%c0_13, %c0_14], %77 {strides = array<i32>} : memref<8x128xf32, #tpu.memory_space<vmem>>, vector<8x128xf32>,
    %c0_15 = arith.constant 0 : index
    %c0_16 = arith.constant 0 : index
    %79 = vector.load %arg3[%c0_15, %c0_16] : memref<8x128xi32, #tpu.memory_space<vmem>>, vector<8x128xi32>
    tpu.vector_store %arg3[%c0_15, %c0_16], %67 {strides = array<i32>} : memref<8x128xi32, #tpu.memory_space<vmem>>, vector<8x128xi32>,
    return
  }
  func.func @transform_0(%arg0: i32) -> (i32, i32) {
    %c0_i32 = arith.constant 0 : i32
    %c0_i32_0 = arith.constant 0 : i32
    return %arg0, %c0_i32 : i32, i32
  }
  func.func @transform_1(%arg0: i32) -> (i32, i32) {
    %c0_i32 = arith.constant 0 : i32
    %c0_i32_0 = arith.constant 0 : i32
    return %arg0, %c0_i32 : i32, i32
  }
  func.func @transform_2(%arg0: i32) -> (i32, i32) {
    %c0_i32 = arith.constant 0 : i32
    %c0_i32_0 = arith.constant 0 : i32
    return %arg0, %c0_i32 : i32, i32
  }
}

</mosaic_0001>

<bundles_post_ra>
// kernel: tpu_custom_call.1
= control target key start
LH: loop header
LB: loop body
LE: loop exit
PB: predicated region body
PF: predicated region fallthrough
CT: control target
= control target key end

     0   :  { %8 = vsyncpa [#allocation3], 0  ;;  %s265_s0 = inlined_call_operand.hbm [shape: f32[8,128], index: 0, kind: input, shape index: {}]   ;;  %s266_s1 = inlined_call_operand.hbm [shape: f32[8,128], index: 1, kind: output, shape index: {0}]   ;;  %s267_s2 = inlined_call_operand.hbm [shape: s32[8,128], index: 2, kind: output, shape index: {1}]  }
   0x1   :  { %9 = vsyncpa [#allocation4], 0 }
   0x2   :  { %10 = vsyncpa [#allocation7], 0  ;;  %s218_s9 = smov [#allocation2]  }
   0x3   :  { %s17_s10 = sshll.u32 %s218_s9, 4  ;;  %s18_s10 = int_to_ptr.vmem [resolvable:$true] %s17_s10 }
   0x4   :  { %s160_s11 = scalar_lea.vmem %s18_s10, 128  ;;  %p165_p1 = scmp.lt.s32.totalorder %s18_s10, %s18_s10 }
   0x5   :  { %p161_p0 = scmp.ne.s32.totalorder %s18_s10, %s160_s11  ;;  %p166_p2 = scmp.lt.s32.totalorder %s160_s11, %s160_s11 }
   0x7   :  { %p167_p3 = por %p166_p2, %p165_p1 }
   0x9   :  { %p168_p4 = pnand %p167_p3, %p161_p0 }
   0xb   :  { %171 = shalt.err (!%p168_p4)
}
   0xc   :  { %20 = dma.hbm_to_vmem [thread:$0]  %s265_s0, 128, %s18_s10, [#allocation3]  }
   0xd   :  { %212 = dma.done.wait [#allocation3], 128  }
   0xe   :  { %213 = vsyncadd [#allocation3], 4294967168  ;;  %v239_v0 = vld [vmem:[#allocation2] sm:$0xff]  ;;  %v25_v1 = vlaneseq  ;;  %s219_s0 = smov [#allocation6]   ;;  %s220_s15 = smov [#allocation5]  }
   0xf   :  { %27 = vmax.xlane.f32.xlu0 %v239_v0  ;;  %s136_s14 = sshll.u32 %s219_s0, 4  ;;  %s126_s16 = sshll.u32 %s220_s15, 4  ;;  %v116_v61 = vmax.f32 %v239_v0, 0.0  ;;  %s137_s14 = int_to_ptr.vmem [resolvable:$true] %s136_s14  ;;  %s127_s16 = int_to_ptr.vmem [resolvable:$true] %s126_s16 }
  0x10   :  { %v242_v2 = vand.u32 127, %v25_v1  ;;  %s172_s17 = scalar_lea.vmem %s137_s14, 128  ;;  %p177_p6 = scmp.lt.s32.totalorder %s137_s14, %s137_s14 }
  0x11   :  { %p173_p5 = scmp.ne.s32.totalorder %s137_s14, %s172_s17  ;;  %p178_p7 = scmp.lt.s32.totalorder %s172_s17, %s172_s17 }
  0x12   :  { %vm45_vm5 = vcmp.eq.s32.totalorder %v242_v2, 0  ;;  %vm67_vm6 = vcmp.eq.s32.totalorder %v242_v2, 1  ;;  %vm89_vm10 = vcmp.eq.s32.totalorder %v242_v2, 2  ;;  %vm111_vm14 = vcmp.eq.s32.totalorder %v242_v2, 3 }
  0x13   :  { %p179_p8 = por %p178_p7, %p177_p6 }
  0x15   :  { %p180_p9 = pnand %p179_p8, %p173_p5 }
  0x98   :  { %v28_v3 = vpop.xlane.xlu0 %27 }
  0x99   :  { %vm29_vm0 = vcmp.eq.f32.partialorder %v239_v0, %v28_v3 }
  0x9a   :  { %v30_v4 = vsel %vm29_vm0, %v242_v2, 128 }
  0x9b   :  { %v32_v5 = vshra.s32 %v30_v4, 16  ;;  %v31_v7 = vand.u32 65535, %v30_v4 }
  0x9d   :  { %v34_v6 = vcvt.s32.f32 %v32_v5  ;;  %v33_v9 = vcvt.s32.f32 %v31_v7 }
  0x9f   :  { %35 = vmin.xlane.f32.xlu0 %v34_v6 }
 0x128   :  { %v36_v8 = vpop.xlane.xlu0 %35 }
 0x129   :  { %vm37_vm1 = vcmp.eq.f32.partialorder %v34_v6, %v36_v8  ;;  %v42_v11 = vcvt.f32.s32 %v36_v8 }
 0x12a   :  { %v38_v10 = vsel %vm37_vm1, %v33_v9, inf }
 0x12b   :  { %39 = vmin.xlane.f32.xlu1 %v38_v10  ;;  %v43_v13 = vshll.u32 %v42_v11, 16 }
 0x1b4   :  { %v40_v12 = vpop.xlane.xlu1 %39 }
 0x1b5   :  { %v41_v14 = vcvt.f32.s32 %v40_v12 }
 0x1b7   :  { %v44_v15 = vadd.s32 %v43_v13, %v41_v14 }
 0x1b9   :  { %vm47_vm2 = vcmp.eq.s32.totalorder %v242_v2, %v44_v15  ;;  %v46_v30 = vsel %vm45_vm5, %v44_v15, 0 }
 0x1ba   :  { %v48_v16 = vsel %vm47_vm2, -inf, %v239_v0 }
 0x1bb   :  { %49 = vmax.xlane.f32.xlu1 %v48_v16 }
 0x244   :  { %v50_v17 = vpop.xlane.xlu1 %49 }
 0x245   :  { %vm51_vm3 = vcmp.eq.f32.partialorder %v48_v16, %v50_v17 }
 0x246   :  { %v52_v18 = vsel %vm51_vm3, %v242_v2, 128 }
 0x247   :  { %v54_v19 = vshra.s32 %v52_v18, 16  ;;  %v53_v21 = vand.u32 65535, %v52_v18 }
 0x249   :  { %v56_v20 = vcvt.s32.f32 %v54_v19  ;;  %v55_v23 = vcvt.s32.f32 %v53_v21 }
 0x24b   :  { %57 = vmin.xlane.f32.xlu0 %v56_v20 }
 0x2d4   :  { %v58_v22 = vpop.xlane.xlu0 %57 }
 0x2d5   :  { %vm59_vm4 = vcmp.eq.f32.partialorder %v56_v20, %v58_v22  ;;  %v64_v25 = vcvt.f32.s32 %v58_v22 }
 0x2d6   :  { %v60_v24 = vsel %vm59_vm4, %v55_v23, inf }
 0x2d7   :  { %61 = vmin.xlane.f32.xlu1 %v60_v24  ;;  %v65_v27 = vshll.u32 %v64_v25, 16 }
 0x360   :  { %v62_v26 = vpop.xlane.xlu1 %61 }
 0x361   :  { %v63_v28 = vcvt.f32.s32 %v62_v26 }
 0x363   :  { %v66_v29 = vadd.s32 %v65_v27, %v63_v28 }
 0x365   :  { %v68_v31 = vsel %vm67_vm6, %v66_v29, %v46_v30  ;;  %vm69_vm7 = vcmp.eq.s32.totalorder %v242_v2, %v66_v29 }
 0x366   :  { %v70_v32 = vsel %vm69_vm7, -inf, %v48_v16 }
 0x367   :  { %71 = vmax.xlane.f32.xlu0 %v70_v32 }
 0x3f0   :  { %v72_v33 = vpop.xlane.xlu0 %71 }
 0x3f1   :  { %vm73_vm8 = vcmp.eq.f32.partialorder %v70_v32, %v72_v33 }
 0x3f2   :  { %v74_v34 = vsel %vm73_vm8, %v242_v2, 128 }
 0x3f3   :  { %v76_v35 = vshra.s32 %v74_v34, 16  ;;  %v75_v37 = vand.u32 65535, %v74_v34 }
 0x3f5   :  { %v78_v36 = vcvt.s32.f32 %v76_v35  ;;  %v77_v39 = vcvt.s32.f32 %v75_v37 }
 0x3f7   :  { %79 = vmin.xlane.f32.xlu1 %v78_v36 }
 0x480   :  { %v80_v38 = vpop.xlane.xlu1 %79 }
 0x481   :  { %vm81_vm9 = vcmp.eq.f32.partialorder %v78_v36, %v80_v38  ;;  %v86_v41 = vcvt.f32.s32 %v80_v38 }
 0x482   :  { %v82_v40 = vsel %vm81_vm9, %v77_v39, inf }
 0x483   :  { %83 = vmin.xlane.f32.xlu0 %v82_v40  ;;  %v87_v43 = vshll.u32 %v86_v41, 16 }
 0x50c   :  { %v84_v42 = vpop.xlane.xlu0 %83 }
 0x50d   :  { %v85_v44 = vcvt.f32.s32 %v84_v42 }
 0x50f   :  { %v88_v45 = vadd.s32 %v87_v43, %v85_v44 }
 0x511   :  { %vm91_vm11 = vcmp.eq.s32.totalorder %v242_v2, %v88_v45  ;;  %v90_v46 = vsel %vm89_vm10, %v88_v45, %v68_v31 }
 0x512   :  { %v92_v47 = vsel %vm91_vm11, -inf, %v70_v32 }
 0x513   :  { %93 = vmax.xlane.f32.xlu1 %v92_v47 }
 0x59c   :  { %v94_v48 = vpop.xlane.xlu1 %93 }
 0x59d   :  { %vm95_vm12 = vcmp.eq.f32.partialorder %v92_v47, %v94_v48 }
 0x59e   :  { %v96_v49 = vsel %vm95_vm12, %v242_v2, 128 }
 0x59f   :  { %v98_v50 = vshra.s32 %v96_v49, 16  ;;  %v97_v52 = vand.u32 65535, %v96_v49 }
 0x5a1   :  { %v100_v51 = vcvt.s32.f32 %v98_v50  ;;  %v99_v54 = vcvt.s32.f32 %v97_v52 }
 0x5a3   :  { %101 = vmin.xlane.f32.xlu0 %v100_v51 }
 0x62c   :  { %v102_v53 = vpop.xlane.xlu0 %101 }
 0x62d   :  { %vm103_vm13 = vcmp.eq.f32.partialorder %v100_v51, %v102_v53  ;;  %v108_v56 = vcvt.f32.s32 %v102_v53 }
 0x62e   :  { %v104_v55 = vsel %vm103_vm13, %v99_v54, inf }
 0x62f   :  { %105 = vmin.xlane.f32.xlu1 %v104_v55  ;;  %v109_v58 = vshll.u32 %v108_v56, 16 }
 0x6b8   :  { %v106_v57 = vpop.xlane.xlu1 %105 }
 0x6b9   :  { %v107_v59 = vcvt.f32.s32 %v106_v57 }
 0x6bb   :  { %v110_v60 = vadd.s32 %v109_v58, %v107_v59 }
 0x6bd   :  { %vm113_vm15 = vcmp.eq.s32.totalorder %v242_v2, %v110_v60  ;;  %v112_v62 = vsel %vm111_vm14, %v110_v60, %v90_v46 }
 0x6be   :  { %v114_v63 = vsel %vm113_vm15, -inf, %v92_v47  ;;  %119 = vst [vmem:[#allocation6] sm:$0xff] %v112_v62 }
 0x6bf   :  { %vm115_vm0 = vcmp.eq.f32.partialorder %v114_v63, -inf }
 0x6c0   :  { %183 = shalt.err (!%p180_p9)
}
 0x6c1   :  { %139 = dma.vmem_to_hbm [thread:$0]  %s137_s14, 128, %s267_s2, [#allocation7]   ;;  %v117_v0 = vsel %vm115_vm0, %v116_v61, 0.0 }
 0x6c2   :  { %118 = vst [vmem:[#allocation5] sm:$0xff] %v117_v0  ;;  %s192_s20 = scalar_lea.vmem %s127_s16, 128  ;;  %p197_p11 = scmp.lt.s32.totalorder %s127_s16, %s127_s16 }
 0x6c3   :  { %p193_p10 = scmp.ne.s32.totalorder %s127_s16, %s192_s20  ;;  %p198_p12 = scmp.lt.s32.totalorder %s192_s20, %s192_s20 }
 0x6c5   :  { %p199_p13 = por %p198_p12, %p197_p11 }
 0x6c7   :  { %p200_p0 = pnand %p199_p13, %p193_p10 }
 0x6c9   :  { %203 = shalt.err (!%p200_p0)
}
 0x6ca   :  { %129 = dma.vmem_to_hbm [thread:$0]  %s127_s16, 128, %s266_s1, [#allocation4]  }
 0x6cb   :  { %214 = dma.done.wait [#allocation4], 128  }
 0x6cc   :  { %215 = vsyncadd [#allocation4], 4294967168 }
 0x6cd   :  { %216 = dma.done.wait [#allocation7], 128  }
 0x6ce   :  { %217 = vsyncadd [#allocation7], 4294967168 }
 0x6cf   :  { %146 = vsyncpa [#allocation3], 1 }
 0x6d0   :  { %147 = vsyncpa [#allocation4], 1 }
 0x6d1   :  { %148 = vsyncpa [#allocation7], 1 }

</bundles_post_ra>
